<compile_context>
chip_gen: v5e
topology: v5e:2x2
jax: 0.10.0
libtpu: 0.0.40
codegen_flags: <defaults>
</compile_context>

<pallas_src>
import functools

import jax
import jax.numpy as jnp
from jax import lax
from jax.experimental import pallas as pl
from jax.experimental.pallas import tpu as pltpu

INV_SQRT_2 = 0.7071067811865476
BN_EPS = 1e-5


def _erf(x):
    # Abramowitz & Stegun 7.1.26 (|err| <= 1.5e-7 in f32). Branchless; divide -> EUP.
    a1, a2, a3, a4, a5 = 0.254829592, -0.284496736, 1.421413741, -1.453152027, 1.061405429
    p = 0.3275911
    ax = jnp.abs(x)
    t = pl.reciprocal((1.0 + p * ax).astype(jnp.float32), approx=True).astype(x.dtype)
    poly = ((((a5 * t + a4) * t + a3) * t + a2) * t + a1) * t
    e = 1.0 - poly * jnp.exp(-ax * ax)
    return jnp.where(x < 0, -e, e)


def _gelu_erf(x):
    return 0.5 * x * (1.0 + _erf(x * INV_SQRT_2))


def _gelu_tanh(x):
    # Optional cheaper variant (~1e-3 off the exact erf GELU); off by default.
    c = 0.7978845608028654  # sqrt(2/pi)
    return 0.5 * x * (1.0 + jnp.tanh(c * (x + 0.044715 * x * x * x)))


def _softplus(x):
    # torch.nn.Softplus(beta=1, threshold=20)
    return jnp.where(x > 20.0, x, jnp.log(1.0 + jnp.exp(jnp.minimum(x, 20.0))))


def predictor_kernel(x_ref,
                     w0_ref, b0_ref,                  # input_proj
                     s1_ref, t1_ref, w1_ref, b1_ref,  # block1: BN(256)+GELU+Linear(256,128)
                     s2_ref, t2_ref, w2_ref,          # block2: BN(128)+GELU+Linear(128,64)
                     w3_ref, b3_ref,                  # head: BN(64)+Linear(64,1)+b2 folded
                     o_ref, *, ew_dtype, use_tanh_gelu):
    gelu = _gelu_tanh if use_tanh_gelu else _gelu_erf

    x = x_ref[...]                                               # (tile_m, f_in) bf16

    # input_proj: Linear(f_in, 256) on the MXU, f32 accumulation.
    h0 = jnp.dot(x, w0_ref[...], preferred_element_type=jnp.float32) + b0_ref[...]

    # block1: BN -> GELU -> Dropout(id) -> Linear(256,128); residual = h0[:, :128].
    z = gelu(h0.astype(ew_dtype) * s1_ref[...].astype(ew_dtype)
             + t1_ref[...].astype(ew_dtype))
    h1 = (jnp.dot(z.astype(jnp.bfloat16), w1_ref[...],
                  preferred_element_type=jnp.float32)
          + b1_ref[...] + h0[:, :128])

    # block2: BN -> GELU -> Dropout(id) -> Linear(128,64); residual = h1[:, :64].
    # (b2 is folded into the head bias on the host, so no per-step broadcast add.)
    z = gelu(h1.astype(ew_dtype) * s2_ref[...].astype(ew_dtype)
             + t2_ref[...].astype(ew_dtype))
    h2 = (jnp.dot(z.astype(jnp.bfloat16), w2_ref[...],
                  preferred_element_type=jnp.float32)
          + h1[:, :64])

    # Output head, computed transposed so the store is lane-dense:
    #   (1,64) x (tile_m,64)^T -> (1, tile_m)  (MXU is otherwise idle here).
    out = lax.dot_general(w3_ref[...], h2.astype(jnp.bfloat16),
                          dimension_numbers=(((1,), (1,)), ((), ())),
                          preferred_element_type=jnp.float32) + b3_ref[...]
    o_ref[...] = _softplus(out)                                  # (1, tile_m) f32


def _round_up(n, m):
    return ((n + m - 1) // m) * m


def _device_kind():
    try:
        return jax.devices()[0].device_kind.lower()
    except Exception:
        return ""


def make_params(input_size, key):
    """Deterministic parameter init mirroring the module's __init__ (eval mode)."""
    ks = jax.random.split(key, 4)
    ortho = jax.nn.initializers.orthogonal()

    # nn.Linear weights are (out, in); orthogonal init, zero bias. Transpose for kernel.
    w0 = ortho(ks[0], (256, input_size), jnp.float32).T       # (in, 256)
    w1 = ortho(ks[1], (128, 256), jnp.float32).T               # (256, 128)
    w2 = ortho(ks[2], (64, 128), jnp.float32).T                # (128, 64)
    w3 = ortho(ks[3], (1, 64), jnp.float32)                    # keep as (1, 64) row
    b0 = jnp.zeros((1, 256), jnp.float32)
    b1 = jnp.zeros((1, 128), jnp.float32)
    b2 = jnp.zeros((1, 64), jnp.float32)
    b3 = jnp.zeros((1, 1), jnp.float32)

    def bn_fold(num_features):
        gamma = jnp.ones((1, num_features), jnp.float32)
        beta = jnp.zeros((1, num_features), jnp.float32)
        mean = jnp.zeros((1, num_features), jnp.float32)
        var = jnp.ones((1, num_features), jnp.float32)
        scale = gamma / jnp.sqrt(var + BN_EPS)
        shift = beta - mean * scale
        return scale, shift

    s1, t1 = bn_fold(256)
    s2, t2 = bn_fold(128)
    s3, t3 = bn_fold(64)

    # Fold head BN + block2 bias into the (1,64) head row / scalar bias (exact: no
    # nonlinearity between Linear(128,64)+residual and the head):
    #   softplus(((h_nb + b2)*s3 + t3) @ W3^T + b3)
    #     == softplus(h_nb @ (s3*W3)^T + [b3 + t3@W3^T + b2@(s3*W3)^T])
    w3_row = s3 * w3                                                       # (1, 64)
    b3_f = (b3 + jnp.sum(t3 * w3, axis=-1, keepdims=True)
            + jnp.sum(b2 * w3_row, axis=-1, keepdims=True))                # (1, 1)

    # bf16 MXU operands for the matmuls; biases/BN folds stay f32.
    return (w0.astype(jnp.bfloat16), b0,
            s1, t1, w1.astype(jnp.bfloat16), b1,
            s2, t2, w2.astype(jnp.bfloat16),
            w3_row.astype(jnp.bfloat16), b3_f)


def enhanced_interaction_predictor(x, params, *, tile_m=2048, use_tanh_gelu=False):
    B, f_in = x.shape

    kind = _device_kind()
    is_v5 = "v5" in kind
    is_v7 = "v7" in kind
    num_cores = 2 if is_v7 else 1

    # BN+GELU elementwise math: bf16 on v6e/v7x (native bf16 VPU/EUP); f32 on v5e.
    ew_dtype = jnp.float32 if is_v5 else jnp.bfloat16

    # Batch tile: big (amortizes ~0.35us/step grid overhead), multiple of 16 (bf16
    # sublane packing), never larger than the padded batch, and on v7x capped so the
    # "parallel" grid has at least `num_cores` steps to feed both TensorCores.
    tile_m = max(16, _round_up(int(tile_m), 16))
    if num_cores >= 2 and B > 16:
        tile_m = min(tile_m, _round_up(-(-B // num_cores), 16))
    tile_m = min(tile_m, _round_up(B, 16))
    b_pad = _round_up(B, tile_m)
    num_tiles = b_pad // tile_m

    # Halve the only large HBM input stream: feed the kernel bf16 activations.
    xb = x.astype(jnp.bfloat16)
    if b_pad != B:
        xb = jnp.pad(xb, ((0, b_pad - B), (0, 0)))

    # x/out tiled over batch; params use constant index_maps so they stay VMEM-resident.
    in_specs = [pl.BlockSpec((tile_m, f_in), lambda i: (i, 0))]
    for p in params:
        in_specs.append(pl.BlockSpec(p.shape, lambda i: (0, 0)))
    # Lane-dense output: one full (1, tile_m) row of f32 per grid step.
    out_spec = pl.BlockSpec((None, 1, tile_m), lambda i: (i, 0, 0))

    flops = 2 * b_pad * (f_in * 256 + 256 * 128 + 128 * 64 + 64)
    transcendentals = b_pad * (2 * (256 + 128) + 1)   # exp+recip in GELU, softplus
    bytes_accessed = (b_pad * f_in * 2 + b_pad * 4
                      + sum(int(p.size) * p.dtype.itemsize for p in params))

    vmem_limit = (48 if is_v7 else 64) * 1024 * 1024

    kernel = functools.partial(predictor_kernel,
                               ew_dtype=ew_dtype, use_tanh_gelu=use_tanh_gelu)

    out = pl.pallas_call(
        kernel,
        out_shape=jax.ShapeDtypeStruct((num_tiles, 1, tile_m), jnp.float32),
        grid=(num_tiles,),
        in_specs=in_specs,
        out_specs=out_spec,
        compiler_params=pltpu.CompilerParams(
            dimension_semantics=("parallel",),       # megacore sharding on v7x
            vmem_limit_bytes=vmem_limit),
        cost_estimate=pl.CostEstimate(
            flops=flops,
            transcendentals=transcendentals,
            bytes_accessed=bytes_accessed),
    )(xb, *params)

    # Padded rows (softplus(b3) != 0) are sliced off here; do not reduce before slicing.
    return out.reshape(b_pad, 1)[:B]


if __name__ == "__main__":
    INPUT_SIZE = 32

    key = jax.random.PRNGKey(0)
    k_x, k_p = jax.random.split(key)
    params = make_params(INPUT_SIZE, k_p)

    # Small demo batch (grid of 1, tile = 16 rows after padding).
    x_small = jax.random.normal(k_x, (8, INPUT_SIZE), jnp.float32)
    out_small = jax.block_until_ready(enhanced_interaction_predictor(x_small, params))
    assert out_small.shape == (8, 1)
    assert bool(jnp.all(jnp.isfinite(out_small)))
    assert bool(jnp.all(out_small >= 0.0))   # Softplus output is non-negative

    # Larger batch exercising batch tiling (grid=4, "parallel" axis) + row padding.
    x_big = jax.random.normal(k_x, (1000, INPUT_SIZE), jnp.float32)
    out_big = jax.block_until_ready(
        enhanced_interaction_predictor(x_big, params, tile_m=256))
    assert out_big.shape == (1000, 1)
    assert bool(jnp.all(jnp.isfinite(out_big)))
    assert bool(jnp.all(out_big >= 0.0))

    print("KERNEL_OK")
</pallas_src>

<mosaic_0001>
module attributes {stable_mosaic.version = 11 : i64} {
  func.func @predictor_kernel(%arg0: i32, %arg1: memref<16x32xbf16, #tpu.memory_space<vmem>>, %arg2: memref<32x256xbf16, #tpu.memory_space<vmem>>, %arg3: memref<1x256xf32, #tpu.memory_space<vmem>>, %arg4: memref<1x256xf32, #tpu.memory_space<vmem>>, %arg5: memref<1x256xf32, #tpu.memory_space<vmem>>, %arg6: memref<256x128xbf16, #tpu.memory_space<vmem>>, %arg7: memref<1x128xf32, #tpu.memory_space<vmem>>, %arg8: memref<1x128xf32, #tpu.memory_space<vmem>>, %arg9: memref<1x128xf32, #tpu.memory_space<vmem>>, %arg10: memref<128x64xbf16, #tpu.memory_space<vmem>>, %arg11: memref<1x64xbf16, #tpu.memory_space<vmem>>, %arg12: memref<1x1xf32, #tpu.memory_space<vmem>>, %arg13: memref<1x1x16xf32, #tpu.memory_space<vmem>>) attributes {dimension_semantics = [#tpu.dimension_semantics<parallel>], iteration_bounds = array<i64: 1>, scalar_prefetch = 0 : i64, scratch_operands = 0 : i64, tpu.core_type = #tpu.core_type<tc>, window_params = [{transform_indices = @transform_0, window_bounds = array<i64: 16, 32>}, {pipeline_mode = #tpu.pipeline_mode<synchronous>, transform_indices = @transform_1, window_bounds = array<i64: 32, 256>}, {pipeline_mode = #tpu.pipeline_mode<synchronous>, transform_indices = @transform_2, window_bounds = array<i64: 1, 256>}, {pipeline_mode = #tpu.pipeline_mode<synchronous>, transform_indices = @transform_3, window_bounds = array<i64: 1, 256>}, {pipeline_mode = #tpu.pipeline_mode<synchronous>, transform_indices = @transform_4, window_bounds = array<i64: 1, 256>}, {pipeline_mode = #tpu.pipeline_mode<synchronous>, transform_indices = @transform_5, window_bounds = array<i64: 256, 128>}, {pipeline_mode = #tpu.pipeline_mode<synchronous>, transform_indices = @transform_6, window_bounds = array<i64: 1, 128>}, {pipeline_mode = #tpu.pipeline_mode<synchronous>, transform_indices = @transform_7, window_bounds = array<i64: 1, 128>}, {pipeline_mode = #tpu.pipeline_mode<synchronous>, transform_indices = @transform_8, window_bounds = array<i64: 1, 128>}, {pipeline_mode = #tpu.pipeline_mode<synchronous>, transform_indices = @transform_9, window_bounds = array<i64: 128, 64>}, {pipeline_mode = #tpu.pipeline_mode<synchronous>, transform_indices = @transform_10, window_bounds = array<i64: 1, 64>}, {pipeline_mode = #tpu.pipeline_mode<synchronous>, transform_indices = @transform_11, window_bounds = array<i64: 1, 1>}, {transform_indices = @transform_12, window_bounds = array<i64: 1, 1, 16>}]} {
    %c0 = arith.constant 0 : index
    %c0_0 = arith.constant 0 : index
    %0 = vector.load %arg1[%c0, %c0_0] : memref<16x32xbf16, #tpu.memory_space<vmem>>, vector<16x32xbf16>
    %c0_1 = arith.constant 0 : index
    %c0_2 = arith.constant 0 : index
    %1 = vector.load %arg2[%c0_1, %c0_2] : memref<32x256xbf16, #tpu.memory_space<vmem>>, vector<32x256xbf16>
    %cst = arith.constant dense<0.000000e+00> : vector<16x256xf32>
    %2 = tpu.matmul %0, %1, %cst {dimension_numbers = #tpu.dot_dimension_numbers<[1], [0], [0], [1], [0, 0, 1, 1], [], []>} : vector<16x32xbf16>, vector<32x256xbf16>, vector<16x256xf32> -> vector<16x256xf32>
    %c0_3 = arith.constant 0 : index
    %c0_4 = arith.constant 0 : index
    %3 = vector.load %arg3[%c0_3, %c0_4] : memref<1x256xf32, #tpu.memory_space<vmem>>, vector<1x256xf32>
    %4 = vector.broadcast %3 : vector<1x256xf32> to vector<16x256xf32>
    %5 = arith.addf %2, %4 : vector<16x256xf32>
    %6 = arith.truncf %5 : vector<16x256xf32> to vector<16x256xbf16>
    %c0_5 = arith.constant 0 : index
    %c0_6 = arith.constant 0 : index
    %7 = vector.load %arg4[%c0_5, %c0_6] : memref<1x256xf32, #tpu.memory_space<vmem>>, vector<1x256xf32>
    %8 = arith.truncf %7 : vector<1x256xf32> to vector<1x256xbf16>
    %9 = vector.broadcast %8 : vector<1x256xbf16> to vector<16x256xbf16>
    %10 = arith.mulf %6, %9 : vector<16x256xbf16>
    %c0_7 = arith.constant 0 : index
    %c0_8 = arith.constant 0 : index
    %11 = vector.load %arg5[%c0_7, %c0_8] : memref<1x256xf32, #tpu.memory_space<vmem>>, vector<1x256xf32>
    %12 = arith.truncf %11 : vector<1x256xf32> to vector<1x256xbf16>
    %13 = vector.broadcast %12 : vector<1x256xbf16> to vector<16x256xbf16>
    %14 = arith.addf %10, %13 : vector<16x256xbf16>
    %cst_9 = arith.constant 5.000000e-01 : bf16
    %15 = vector.broadcast %cst_9 : bf16 to vector<16x256xbf16>
    %16 = arith.mulf %15, %14 : vector<16x256xbf16>
    %cst_10 = arith.constant 7.070310e-01 : bf16
    %17 = vector.broadcast %cst_10 : bf16 to vector<16x256xbf16>
    %18 = arith.mulf %14, %17 : vector<16x256xbf16>
    %19 = math.absf %18 : vector<16x256xbf16>
    %cst_11 = arith.constant 3.281250e-01 : bf16
    %20 = vector.broadcast %cst_11 : bf16 to vector<16x256xbf16>
    %21 = arith.mulf %20, %19 : vector<16x256xbf16>
    %cst_12 = arith.constant 1.000000e+00 : bf16
    %22 = vector.broadcast %cst_12 : bf16 to vector<16x256xbf16>
    %23 = arith.addf %22, %21 : vector<16x256xbf16>
    %24 = arith.extf %23 : vector<16x256xbf16> to vector<16x256xf32>
    %25 = tpu.reciprocal %24 {approx = true} : vector<16x256xf32> -> vector<16x256xf32>
    %26 = arith.truncf %25 : vector<16x256xf32> to vector<16x256xbf16>
    %cst_13 = arith.constant 1.062500e+00 : bf16
    %27 = vector.broadcast %cst_13 : bf16 to vector<16x256xbf16>
    %28 = arith.mulf %27, %26 : vector<16x256xbf16>
    %cst_14 = arith.constant -1.453130e+00 : bf16
    %29 = vector.broadcast %cst_14 : bf16 to vector<16x256xbf16>
    %30 = arith.addf %28, %29 : vector<16x256xbf16>
    %31 = arith.mulf %30, %26 : vector<16x256xbf16>
    %cst_15 = arith.constant 1.421880e+00 : bf16
    %32 = vector.broadcast %cst_15 : bf16 to vector<16x256xbf16>
    %33 = arith.addf %31, %32 : vector<16x256xbf16>
    %34 = arith.mulf %33, %26 : vector<16x256xbf16>
    %cst_16 = arith.constant -2.851560e-01 : bf16
    %35 = vector.broadcast %cst_16 : bf16 to vector<16x256xbf16>
    %36 = arith.addf %34, %35 : vector<16x256xbf16>
    %37 = arith.mulf %36, %26 : vector<16x256xbf16>
    %cst_17 = arith.constant 2.539060e-01 : bf16
    %38 = vector.broadcast %cst_17 : bf16 to vector<16x256xbf16>
    %39 = arith.addf %37, %38 : vector<16x256xbf16>
    %40 = arith.mulf %39, %26 : vector<16x256xbf16>
    %cst_18 = arith.constant 0.000000e+00 : bf16
    %41 = vector.broadcast %cst_18 : bf16 to vector<16x256xbf16>
    %42 = arith.subf %41, %19 : vector<16x256xbf16>
    %43 = arith.mulf %42, %19 : vector<16x256xbf16>
    %44 = math.exp %43 : vector<16x256xbf16>
    %45 = arith.mulf %40, %44 : vector<16x256xbf16>
    %cst_19 = arith.constant 1.000000e+00 : bf16
    %46 = vector.broadcast %cst_19 : bf16 to vector<16x256xbf16>
    %47 = arith.subf %46, %45 : vector<16x256xbf16>
    %cst_20 = arith.constant 0.000000e+00 : bf16
    %48 = vector.broadcast %cst_20 : bf16 to vector<16x256xbf16>
    %49 = arith.cmpf olt, %18, %48 : vector<16x256xbf16>
    %cst_21 = arith.constant 0.000000e+00 : bf16
    %50 = vector.broadcast %cst_21 : bf16 to vector<16x256xbf16>
    %51 = arith.subf %50, %47 : vector<16x256xbf16>
    %52 = arith.select %49, %51, %47 : vector<16x256xi1>, vector<16x256xbf16>
    %cst_22 = arith.constant 1.000000e+00 : bf16
    %53 = vector.broadcast %cst_22 : bf16 to vector<16x256xbf16>
    %54 = arith.addf %53, %52 : vector<16x256xbf16>
    %55 = arith.mulf %16, %54 : vector<16x256xbf16>
    %c0_23 = arith.constant 0 : index
    %c0_24 = arith.constant 0 : index
    %56 = vector.load %arg6[%c0_23, %c0_24] : memref<256x128xbf16, #tpu.memory_space<vmem>>, vector<256x128xbf16>
    %cst_25 = arith.constant dense<0.000000e+00> : vector<16x128xf32>
    %57 = tpu.matmul %55, %56, %cst_25 {dimension_numbers = #tpu.dot_dimension_numbers<[1], [0], [0], [1], [0, 0, 1, 1], [], []>} : vector<16x256xbf16>, vector<256x128xbf16>, vector<16x128xf32> -> vector<16x128xf32>
    %c0_26 = arith.constant 0 : index
    %c0_27 = arith.constant 0 : index
    %58 = vector.load %arg7[%c0_26, %c0_27] : memref<1x128xf32, #tpu.memory_space<vmem>>, vector<1x128xf32>
    %59 = vector.broadcast %58 : vector<1x128xf32> to vector<16x128xf32>
    %60 = arith.addf %57, %59 : vector<16x128xf32>
    %61 = vector.extract_strided_slice %5 {offsets = [0, 0], sizes = [16, 128], strides = [1, 1]} : vector<16x256xf32> to vector<16x128xf32>
    %62 = arith.addf %60, %61 : vector<16x128xf32>
    %63 = arith.truncf %62 : vector<16x128xf32> to vector<16x128xbf16>
    %c0_28 = arith.constant 0 : index
    %c0_29 = arith.constant 0 : index
    %64 = vector.load %arg8[%c0_28, %c0_29] : memref<1x128xf32, #tpu.memory_space<vmem>>, vector<1x128xf32>
    %65 = arith.truncf %64 : vector<1x128xf32> to vector<1x128xbf16>
    %66 = vector.broadcast %65 : vector<1x128xbf16> to vector<16x128xbf16>
    %67 = arith.mulf %63, %66 : vector<16x128xbf16>
    %c0_30 = arith.constant 0 : index
    %c0_31 = arith.constant 0 : index
    %68 = vector.load %arg9[%c0_30, %c0_31] : memref<1x128xf32, #tpu.memory_space<vmem>>, vector<1x128xf32>
    %69 = arith.truncf %68 : vector<1x128xf32> to vector<1x128xbf16>
    %70 = vector.broadcast %69 : vector<1x128xbf16> to vector<16x128xbf16>
    %71 = arith.addf %67, %70 : vector<16x128xbf16>
    %cst_32 = arith.constant 5.000000e-01 : bf16
    %72 = vector.broadcast %cst_32 : bf16 to vector<16x128xbf16>
    %73 = arith.mulf %72, %71 : vector<16x128xbf16>
    %cst_33 = arith.constant 7.070310e-01 : bf16
    %74 = vector.broadcast %cst_33 : bf16 to vector<16x128xbf16>
    %75 = arith.mulf %71, %74 : vector<16x128xbf16>
    %76 = math.absf %75 : vector<16x128xbf16>
    %cst_34 = arith.constant 3.281250e-01 : bf16
    %77 = vector.broadcast %cst_34 : bf16 to vector<16x128xbf16>
    %78 = arith.mulf %77, %76 : vector<16x128xbf16>
    %cst_35 = arith.constant 1.000000e+00 : bf16
    %79 = vector.broadcast %cst_35 : bf16 to vector<16x128xbf16>
    %80 = arith.addf %79, %78 : vector<16x128xbf16>
    %81 = arith.extf %80 : vector<16x128xbf16> to vector<16x128xf32>
    %82 = tpu.reciprocal %81 {approx = true} : vector<16x128xf32> -> vector<16x128xf32>
    %83 = arith.truncf %82 : vector<16x128xf32> to vector<16x128xbf16>
    %cst_36 = arith.constant 1.062500e+00 : bf16
    %84 = vector.broadcast %cst_36 : bf16 to vector<16x128xbf16>
    %85 = arith.mulf %84, %83 : vector<16x128xbf16>
    %cst_37 = arith.constant -1.453130e+00 : bf16
    %86 = vector.broadcast %cst_37 : bf16 to vector<16x128xbf16>
    %87 = arith.addf %85, %86 : vector<16x128xbf16>
    %88 = arith.mulf %87, %83 : vector<16x128xbf16>
    %cst_38 = arith.constant 1.421880e+00 : bf16
    %89 = vector.broadcast %cst_38 : bf16 to vector<16x128xbf16>
    %90 = arith.addf %88, %89 : vector<16x128xbf16>
    %91 = arith.mulf %90, %83 : vector<16x128xbf16>
    %cst_39 = arith.constant -2.851560e-01 : bf16
    %92 = vector.broadcast %cst_39 : bf16 to vector<16x128xbf16>
    %93 = arith.addf %91, %92 : vector<16x128xbf16>
    %94 = arith.mulf %93, %83 : vector<16x128xbf16>
    %cst_40 = arith.constant 2.539060e-01 : bf16
    %95 = vector.broadcast %cst_40 : bf16 to vector<16x128xbf16>
    %96 = arith.addf %94, %95 : vector<16x128xbf16>
    %97 = arith.mulf %96, %83 : vector<16x128xbf16>
    %cst_41 = arith.constant 0.000000e+00 : bf16
    %98 = vector.broadcast %cst_41 : bf16 to vector<16x128xbf16>
    %99 = arith.subf %98, %76 : vector<16x128xbf16>
    %100 = arith.mulf %99, %76 : vector<16x128xbf16>
    %101 = math.exp %100 : vector<16x128xbf16>
    %102 = arith.mulf %97, %101 : vector<16x128xbf16>
    %cst_42 = arith.constant 1.000000e+00 : bf16
    %103 = vector.broadcast %cst_42 : bf16 to vector<16x128xbf16>
    %104 = arith.subf %103, %102 : vector<16x128xbf16>
    %cst_43 = arith.constant 0.000000e+00 : bf16
    %105 = vector.broadcast %cst_43 : bf16 to vector<16x128xbf16>
    %106 = arith.cmpf olt, %75, %105 : vector<16x128xbf16>
    %cst_44 = arith.constant 0.000000e+00 : bf16
    %107 = vector.broadcast %cst_44 : bf16 to vector<16x128xbf16>
    %108 = arith.subf %107, %104 : vector<16x128xbf16>
    %109 = arith.select %106, %108, %104 : vector<16x128xi1>, vector<16x128xbf16>
    %cst_45 = arith.constant 1.000000e+00 : bf16
    %110 = vector.broadcast %cst_45 : bf16 to vector<16x128xbf16>
    %111 = arith.addf %110, %109 : vector<16x128xbf16>
    %112 = arith.mulf %73, %111 : vector<16x128xbf16>
    %c0_46 = arith.constant 0 : index
    %c0_47 = arith.constant 0 : index
    %113 = vector.load %arg10[%c0_46, %c0_47] : memref<128x64xbf16, #tpu.memory_space<vmem>>, vector<128x64xbf16>
    %cst_48 = arith.constant dense<0.000000e+00> : vector<16x64xf32>
    %114 = tpu.matmul %112, %113, %cst_48 {dimension_numbers = #tpu.dot_dimension_numbers<[1], [0], [0], [1], [0, 0, 1, 1], [], []>} : vector<16x128xbf16>, vector<128x64xbf16>, vector<16x64xf32> -> vector<16x64xf32>
    %115 = vector.extract_strided_slice %62 {offsets = [0, 0], sizes = [16, 64], strides = [1, 1]} : vector<16x128xf32> to vector<16x64xf32>
    %116 = arith.addf %114, %115 : vector<16x64xf32>
    %c0_49 = arith.constant 0 : index
    %c0_50 = arith.constant 0 : index
    %117 = vector.load %arg11[%c0_49, %c0_50] : memref<1x64xbf16, #tpu.memory_space<vmem>>, vector<1x64xbf16>
    %118 = arith.truncf %116 : vector<16x64xf32> to vector<16x64xbf16>
    %cst_51 = arith.constant dense<0.000000e+00> : vector<1x16xf32>
    %119 = tpu.matmul %117, %118, %cst_51 {dimension_numbers = #tpu.dot_dimension_numbers<[1], [1], [0], [0], [0, 0, 1, 0], [], []>} : vector<1x64xbf16>, vector<16x64xbf16>, vector<1x16xf32> -> vector<1x16xf32>
    %c0_52 = arith.constant 0 : index
    %c0_53 = arith.constant 0 : index
    %120 = vector.load %arg12[%c0_52, %c0_53] : memref<1x1xf32, #tpu.memory_space<vmem>>, vector<1x1xf32>
    %121 = vector.broadcast %120 : vector<1x1xf32> to vector<1x16xf32>
    %122 = arith.addf %119, %121 : vector<1x16xf32>
    %cst_54 = arith.constant 2.000000e+01 : f32
    %123 = vector.broadcast %cst_54 : f32 to vector<1x16xf32>
    %124 = arith.cmpf ogt, %122, %123 : vector<1x16xf32>
    %cst_55 = arith.constant 2.000000e+01 : f32
    %125 = vector.broadcast %cst_55 : f32 to vector<1x16xf32>
    %126 = arith.minimumf %122, %125 : vector<1x16xf32>
    %127 = math.exp %126 : vector<1x16xf32>
    %cst_56 = arith.constant 1.000000e+00 : f32
    %128 = vector.broadcast %cst_56 : f32 to vector<1x16xf32>
    %129 = arith.addf %128, %127 : vector<1x16xf32>
    %130 = math.log %129 : vector<1x16xf32>
    %131 = arith.select %124, %122, %130 : vector<1x16xi1>, vector<1x16xf32>
    %c0_57 = arith.constant 0 : index
    %c0_58 = arith.constant 0 : index
    %c0_59 = arith.constant 0 : index
    %132 = vector.load %arg13[%c0_57, %c0_58, %c0_59] : memref<1x1x16xf32, #tpu.memory_space<vmem>>, vector<1x1x16xf32>
    %133 = vector.shape_cast %132 : vector<1x1x16xf32> to vector<1x16xf32>
    %134 = vector.shape_cast %131 : vector<1x16xf32> to vector<1x1x16xf32>
    tpu.vector_store %arg13[%c0_57, %c0_58, %c0_59], %134 {strides = array<i32>} : memref<1x1x16xf32, #tpu.memory_space<vmem>>, vector<1x1x16xf32>,
    return
  }
  func.func @transform_0(%arg0: i32) -> (i32, i32) {
    %c0_i32 = arith.constant 0 : i32
    %c0_i32_0 = arith.constant 0 : i32
    return %arg0, %c0_i32 : i32, i32
  }
  func.func @transform_1(%arg0: i32) -> (i32, i32) {
    %c0_i32 = arith.constant 0 : i32
    %c0_i32_0 = arith.constant 0 : i32
    %c0_i32_1 = arith.constant 0 : i32
    return %c0_i32, %c0_i32_0 : i32, i32
  }
  func.func @transform_2(%arg0: i32) -> (i32, i32) {
    %c0_i32 = arith.constant 0 : i32
    %c0_i32_0 = arith.constant 0 : i32
    %c0_i32_1 = arith.constant 0 : i32
    return %c0_i32, %c0_i32_0 : i32, i32
  }
  func.func @transform_3(%arg0: i32) -> (i32, i32) {
    %c0_i32 = arith.constant 0 : i32
    %c0_i32_0 = arith.constant 0 : i32
    %c0_i32_1 = arith.constant 0 : i32
    return %c0_i32, %c0_i32_0 : i32, i32
  }
  func.func @transform_4(%arg0: i32) -> (i32, i32) {
    %c0_i32 = arith.constant 0 : i32
    %c0_i32_0 = arith.constant 0 : i32
    %c0_i32_1 = arith.constant 0 : i32
    return %c0_i32, %c0_i32_0 : i32, i32
  }
  func.func @transform_5(%arg0: i32) -> (i32, i32) {
    %c0_i32 = arith.constant 0 : i32
    %c0_i32_0 = arith.constant 0 : i32
    %c0_i32_1 = arith.constant 0 : i32
    return %c0_i32, %c0_i32_0 : i32, i32
  }
  func.func @transform_6(%arg0: i32) -> (i32, i32) {
    %c0_i32 = arith.constant 0 : i32
    %c0_i32_0 = arith.constant 0 : i32
    %c0_i32_1 = arith.constant 0 : i32
    return %c0_i32, %c0_i32_0 : i32, i32
  }
  func.func @transform_7(%arg0: i32) -> (i32, i32) {
    %c0_i32 = arith.constant 0 : i32
    %c0_i32_0 = arith.constant 0 : i32
    %c0_i32_1 = arith.constant 0 : i32
    return %c0_i32, %c0_i32_0 : i32, i32
  }
  func.func @transform_8(%arg0: i32) -> (i32, i32) {
    %c0_i32 = arith.constant 0 : i32
    %c0_i32_0 = arith.constant 0 : i32
    %c0_i32_1 = arith.constant 0 : i32
    return %c0_i32, %c0_i32_0 : i32, i32
  }
  func.func @transform_9(%arg0: i32) -> (i32, i32) {
    %c0_i32 = arith.constant 0 : i32
    %c0_i32_0 = arith.constant 0 : i32
    %c0_i32_1 = arith.constant 0 : i32
    return %c0_i32, %c0_i32_0 : i32, i32
  }
  func.func @transform_10(%arg0: i32) -> (i32, i32) {
    %c0_i32 = arith.constant 0 : i32
    %c0_i32_0 = arith.constant 0 : i32
    %c0_i32_1 = arith.constant 0 : i32
    return %c0_i32, %c0_i32_0 : i32, i32
  }
  func.func @transform_11(%arg0: i32) -> (i32, i32) {
    %c0_i32 = arith.constant 0 : i32
    %c0_i32_0 = arith.constant 0 : i32
    %c0_i32_1 = arith.constant 0 : i32
    return %c0_i32, %c0_i32_0 : i32, i32
  }
  func.func @transform_12(%arg0: i32) -> (i32, i32, i32) {
    %c0_i32 = arith.constant 0 : i32
    %c0_i32_0 = arith.constant 0 : i32
    %c0_i32_1 = arith.constant 0 : i32
    return %arg0, %c0_i32, %c0_i32_0 : i32, i32, i32
  }
}

</mosaic_0001>

<bundles_post_ra>
// kernel: tpu_custom_call.1
= control target key start
LH: loop header
LB: loop body
LE: loop exit
PB: predicated region body
PF: predicated region fallthrough
CT: control target
= control target key end

     0   :  { %s1401_s0 = inlined_call_operand.vmem [shape: bf16[16,32], index: 0, kind: input, shape index: {}]   ;;  %s1402_s1 = inlined_call_operand.vmem [shape: bf16[32,256], index: 1, kind: input, shape index: {}]   ;;  %s1403_s2 = inlined_call_operand.vmem [shape: f32[1,256], index: 2, kind: input, shape index: {}]   ;;  %s1404_s3 = inlined_call_operand.vmem [shape: f32[1,256], index: 3, kind: input, shape index: {}]   ;;  %s1405_s4 = inlined_call_operand.vmem [shape: f32[1,256], index: 4, kind: input, shape index: {}]   ;;  %s1406_s5 = inlined_call_operand.hbm [shape: bf16[256,128], index: 5, kind: input, shape index: {}]   ;;  %s1407_s6 = inlined_call_operand.vmem [shape: f32[1,128], index: 6, kind: input, shape index: {}]   ;;  %s1408_s7 = inlined_call_operand.vmem [shape: f32[1,128], index: 7, kind: input, shape index: {}]   ;;  %s1409_s8 = inlined_call_operand.vmem [shape: f32[1,128], index: 8, kind: input, shape index: {}]   ;;  %s1410_s9 = inlined_call_operand.vmem [shape: bf16[128,64], index: 9, kind: input, shape index: {}]   ;;  %s1411_s10 = inlined_call_operand.vmem [shape: bf16[1,64], index: 10, kind: input, shape index: {}]   ;;  %s1412_s11 = inlined_call_operand.<no memory space> [shape: f32[1,1], index: 11, kind: input, shape index: {}]   ;;  %s1413_s12 = inlined_call_operand.hbm [shape: f32[1,1,16], index: 12, kind: output, shape index: {}]  }
   0x1   :  { %v17_v0 = vstv %s1412_s11 }
   0x2   :  { %18 = vst [vmem:[#allocation2] sm:$0x1] %v17_v0 }
   0x3   :  { %19 = vsyncpa [#allocation4], 0 }
   0x4   :  { %20 = vsyncpa [#allocation5], 0  ;;  %s35_s25 = sshll.u32 %s1406_s5, 4  ;;  %s1136_s26 = smov [#allocation3]   ;;  %s36_s25 = int_to_ptr.hbm [resolvable:$true] %s35_s25 }
   0x5   :  { %s37_s27 = sshll.u32 %s1136_s26, 4  ;;  %s1137_s28 = smov 64   ;;  %s38_s27 = int_to_ptr.vmem [resolvable:$true] %s37_s27 }
   0x6   :  { %s1138_s29 = smov 4  }
   0x7   :  { %43 = dma.hbm_to_vmem [thread:$0]  %s36_s25, 2048, %s38_s27, [#allocation4], %s1137_s28, %s1137_s28, %s1138_s29  }
   0x8   :  { %1132 = dma.done.wait [#allocation4], 2048  }
   0x9   :  { %1133 = vsyncadd [#allocation4], 4294965248  ;;  %v915_v1 = vld [vmem:[%s1402_s1 + $0x10] sm:$0xf]  ;;  %v1024_v2 = vld [vmem:[%s1402_s1 + $0x14] sm:$0xf0] }
   0xa   :  { %v1023_v3 = vld [vmem:[%s1402_s1 + $0x14] sm:$0xf]  ;;  %v916_v4 = vor.u32 %v1024_v2, %v915_v1  ;;  %v917_v5 = vld [vmem:[%s1402_s1 + $0x18] sm:$0xf0]  ;;  %v907_v6 = vld [vmem:[%s1402_s1] sm:$0xf] }
   0xb   :  { %v1022_v7 = vld [vmem:[%s1402_s1 + $0x4] sm:$0xf0]  ;;  %v920_v8 = vor.u32 %v1023_v3, %v917_v5  ;;  %v1021_v9 = vld [vmem:[%s1402_s1 + $0x4] sm:$0xf]  ;;  %v909_v10 = vld [vmem:[%s1402_s1 + $0x8] sm:$0xf0] }
   0xc   :  { %108 = vmatpush.bf16.msra.mxu0 %v916_v4  ;;  %v908_v11 = vor.u32 %v1022_v7, %v907_v6  ;;  %v912_v12 = vor.u32 %v1021_v9, %v909_v10  ;;  %v1020_v13 = vld [vmem:[%s1401_s0] sm:$0xff]  ;;  %vm98_vm0 = vcmask 261120   ;;  %v1031_v28 = vld [vmem:[#allocation3 + $0x30] sm:$0xff]  ;;  %v1030_v35 = vld [vmem:[#allocation3 + $0x28] sm:$0xff]  ;;  %vm854_vm11 = vcmask 523264   ;;  %s1140_s29 = smov [#allocation6]  }
   0xd   :  { %122 = vmatpush.bf16.msra.mxu1 %v920_v8  ;;  %v132_v14 = vld [vmem:[%s1404_s3] sm:$0x3]  ;;  %v1039_v29 = vld [vmem:[#allocation3 + $0x70] sm:$0xff]  ;;  %v1038_v36 = vld [vmem:[#allocation3 + $0x68] sm:$0xff]  ;;  %s889_s1 = sshll.u32 %s1140_s29, 4  ;;  %s891_s3 = sshll.u32 %s1413_s12, 4  ;;  %s890_s1 = int_to_ptr.vmem [resolvable:$true] %s889_s1  ;;  %s892_s3 = int_to_ptr.hbm [resolvable:$true] %s891_s3 }
   0xe   :  { %v134_v15 = vperm.slane %v132_v14, 0  ;;  %v135_v16 = vperm.slane %v132_v14, 1  ;;  %v164_v17 = vld [vmem:[%s1405_s4] sm:$0x3]  ;;  %v1027_v63 = vld [vmem:[#allocation3 + $0x10] sm:$0xff]  ;;  %v1026_v10 = vld [vmem:[#allocation3 + $0x8] sm:$0xff] }
   0xf   :  { %v166_v19 = vperm.slane %v164_v17, 0  ;;  %v167_v20 = vperm.slane %v164_v17, 1  ;;  %v1032_v24 = vld [vmem:[#allocation3 + $0x38] sm:$0xff]  ;;  %v1029_v44 = vld [vmem:[#allocation3 + $0x20] sm:$0xff]  ;;  %v1035_v0 = vld [vmem:[#allocation3 + $0x50] sm:$0xff]  ;;  %vm882_vm12 = vcmask 122880  }
  0x10   :  { %109 = vmatpush.bf16.msra.mxu0 %v908_v11  ;;  %v138_v18 = vpack.c.bf16 %v135_v16, %v134_v15  ;;  %v1040_v25 = vld [vmem:[#allocation3 + $0x78] sm:$0xff]  ;;  %566 = vmatpush.bf16.msra.mxu2 %v1032_v24  ;;  %v1037_v45 = vld [vmem:[#allocation3 + $0x60] sm:$0xff]  ;;  %v1034_v11 = vld [vmem:[#allocation3 + $0x48] sm:$0xff] }
  0x11   :  { %123 = vmatpush.bf16.msra.mxu1 %v912_v12  ;;  %v170_v23 = vpack.c.bf16 %v167_v20, %v166_v19  ;;  %580 = vmatpush.bf16.msra.mxu3 %v1040_v25  ;;  %v67_v30 = vld [vmem:[%s1403_s2] sm:$0x3] }
  0x12   :  { %v140_v21 = vunpack.c.l.b16 %v138_v18  ;;  %v141_v22 = vunpack.c.h.b16 %v138_v18  ;;  %v69_v37 = vperm.slane %v67_v30, 0  ;;  %v70_v38 = vperm.slane %v67_v30, 1  ;;  %v1028_v54 = vld [vmem:[#allocation3 + $0x18] sm:$0xff]  ;;  %v1025_v18 = vld [vmem:[#allocation3] sm:$0xff] }
  0x13   :  { %921 = vmatmul.msk.bf16.vlgmr.msra.gmra.mxu0 %vm98_vm0, %v1020_v13  ;;  %v172_v31 = vunpack.c.l.b16 %v170_v23  ;;  %v173_v32 = vunpack.c.h.b16 %v170_v23  ;;  %v1036_v55 = vld [vmem:[#allocation3 + $0x58] sm:$0xff]  ;;  %v1033_v19 = vld [vmem:[#allocation3 + $0x40] sm:$0xff] }
  0x14   :  { %922 = vmatmul.msk.bf16.vlgmr.msra.gmra.mxu1 %vm98_vm0, %v1020_v13  ;;  %v142_v26 = vpack.c.b16 %v140_v21, %v140_v21  ;;  %v143_v27 = vpack.c.b16 %v141_v22, %v141_v22  ;;  %567 = vmatpush.bf16.msra.mxu2 %v1031_v28 }
  0x15   :  { %581 = vmatpush.bf16.msra.mxu3 %v1039_v29  ;;  %v174_v39 = vpack.c.b16 %v172_v31, %v172_v31  ;;  %v175_v40 = vpack.c.b16 %v173_v32, %v173_v32 }
  0x16   :  { %v145_v33 = vpack.i.b16 %v142_v26, %v142_v26  ;;  %v149_v34 = vpack.i.b16 %v143_v27, %v143_v27 }
  0x17   :  { %v177_v49 = vpack.i.b16 %v174_v39, %v174_v39  ;;  %v181_v50 = vpack.i.b16 %v175_v40, %v175_v40 }
  0x18   :  { %v147_v42 = vperm.slane %v145_v33, 0  ;;  %v151_v43 = vperm.slane %v149_v34, 0  ;;  %568 = vmatpush.bf16.msra.mxu2 %v1030_v35 }
  0x19   :  { %582 = vmatpush.bf16.msra.mxu3 %v1038_v36  ;;  %v179_v58 = vperm.slane %v177_v49, 0  ;;  %v183_v59 = vperm.slane %v181_v50, 0 }
  0x1a   :  { %v156_v52 = vunpack.c.l.bf16 %v147_v42  ;;  %v157_v53 = vunpack.c.l.bf16 %v151_v43 }
  0x1b   :  { %v188_v4 = vunpack.c.l.bf16 %v179_v58  ;;  %v189_v5 = vunpack.c.l.bf16 %v183_v59 }
  0x1c   :  { %569 = vmatpush.bf16.msra.mxu2 %v1029_v44 }
  0x1d   :  { %583 = vmatpush.bf16.msra.mxu3 %v1037_v45 }
  0x20   :  { %570 = vmatpush.bf16.msra.mxu2 %v1028_v54 }
  0x21   :  { %584 = vmatpush.bf16.msra.mxu3 %v1036_v55 }
  0x24   :  { %571 = vmatpush.bf16.msra.mxu2 %v1027_v63 }
  0x25   :  { %585 = vmatpush.bf16.msra.mxu3 %v1035_v0 }
  0x28   :  { %572 = vmatpush.bf16.msra.mxu2 %v1026_v10 }
  0x29   :  { %586 = vmatpush.bf16.msra.mxu3 %v1034_v11 }
  0x2c   :  { %573 = vmatpush.bf16.msra.mxu2 %v1025_v18 }
  0x2d   :  { %587 = vmatpush.bf16.msra.mxu3 %v1033_v19 }
  0x90   :  { %v111_v41 = vpop.f32.mrf.mxu0 }
  0x91   :  { %v1248_v46 = vadd.f32 %v111_v41, %v69_v37  ;;  %v125_v47 = vpop.f32.mrf.mxu1 }
  0x92   :  { %v126_v48 = vadd.f32 %v125_v47, %v70_v38 }
  0x94   :  { %v130_v51 = vpack.c.bf16 %v126_v48, %v1248_v46 }
  0x96   :  { %v152_v56 = vunpack.c.l.bf16 %v130_v51  ;;  %v153_v57 = vunpack.c.h.bf16 %v130_v51 }
  0x98   :  { %v158_v60 = vmul.f32 %v156_v52, %v152_v56  ;;  %v159_v61 = vmul.f32 %v157_v53, %v153_v57  ;;  %v113_v62 = vpop.f32.mrf.mxu0 }
  0x99   :  { %v1251_v1 = vadd.f32 %v113_v62, %v69_v37  ;;  %v127_v2 = vpop.f32.mrf.mxu1 }
  0x9a   :  { %v162_v3 = vpack.c.bf16 %v159_v61, %v158_v60  ;;  %v128_v6 = vadd.f32 %v127_v2, %v70_v38 }
  0x9c   :  { %v184_v7 = vunpack.c.l.bf16 %v162_v3  ;;  %v185_v8 = vunpack.c.h.bf16 %v162_v3  ;;  %v131_v9 = vpack.c.bf16 %v128_v6, %v1251_v1 }
  0x9e   :  { %v190_v12 = vadd.f32 %v188_v4, %v184_v7  ;;  %v191_v13 = vadd.f32 %v189_v5, %v185_v8  ;;  %v154_v14 = vunpack.c.l.bf16 %v131_v9  ;;  %v155_v15 = vunpack.c.h.bf16 %v131_v9 }
  0xa0   :  { %v160_v16 = vmul.f32 %v156_v52, %v154_v14  ;;  %v161_v17 = vmul.f32 %v157_v53, %v155_v15  ;;  %v194_v20 = vpack.c.bf16 %v191_v13, %v190_v12 }
  0xa2   :  { %v163_v21 = vpack.c.bf16 %v161_v17, %v160_v16  ;;  %v196_v22 = vunpack.c.l.bf16 %v194_v20  ;;  %v197_v23 = vunpack.c.h.bf16 %v194_v20 }
  0xa4   :  { %v186_v24 = vunpack.c.l.bf16 %v163_v21  ;;  %v187_v25 = vunpack.c.h.bf16 %v163_v21  ;;  %v200_v26 = vmul.f32 0.5, %v196_v22  ;;  %v201_v27 = vmul.f32 0.5, %v197_v23 }
  0xa5   :  { %v206_v28 = vmul.f32 0.70703125, %v196_v22  ;;  %v207_v29 = vmul.f32 0.70703125, %v197_v23 }
  0xa6   :  { %v192_v30 = vadd.f32 %v188_v4, %v186_v24  ;;  %v193_v31 = vadd.f32 %v189_v5, %v187_v25  ;;  %v1254_v32 = vpack.c.bf16 %v201_v27, %v200_v26 }
  0xa7   :  { %v1256_v33 = vpack.c.bf16 %v207_v29, %v206_v28 }
  0xa8   :  { %v195_v34 = vpack.c.bf16 %v193_v31, %v192_v30 }
  0xa9   :  { %v212_v35 = vand.u32 2147450879, %v1256_v33 }
  0xaa   :  { %v198_v36 = vunpack.c.l.bf16 %v195_v34  ;;  %v199_v37 = vunpack.c.h.bf16 %v195_v34 }
  0xab   :  { %v1259_v38 = vunpack.c.l.bf16 %v212_v35  ;;  %v1261_v39 = vunpack.c.h.bf16 %v212_v35 }
  0xac   :  { %v202_v40 = vmul.f32 0.5, %v198_v36  ;;  %v203_v41 = vmul.f32 0.5, %v199_v37  ;;  %v208_v42 = vmul.f32 0.70703125, %v198_v36  ;;  %v209_v43 = vmul.f32 0.70703125, %v199_v37 }
  0xad   :  { %v218_v44 = vmul.f32 0.328125, %v1259_v38  ;;  %v219_v45 = vmul.f32 0.328125, %v1261_v39  ;;  %v334_v30 = vsub.f32 0.0, %v1259_v38  ;;  %v335_v31 = vsub.f32 0.0, %v1261_v39 }
  0xae   :  { %v1265_v47 = vpack.c.bf16 %v203_v41, %v202_v40  ;;  %v1267_v48 = vpack.c.bf16 %v209_v43, %v208_v42 }
  0xaf   :  { %v222_v49 = vpack.c.bf16 %v219_v45, %v218_v44  ;;  %v338_v43 = vpack.c.bf16 %v335_v31, %v334_v30 }
  0xb0   :  { %v213_v50 = vand.u32 2147450879, %v1267_v48 }
  0xb1   :  { %v224_v51 = vunpack.c.l.bf16 %v222_v49  ;;  %v225_v52 = vunpack.c.h.bf16 %v222_v49 }
  0xb2   :  { %v1270_v53 = vunpack.c.l.bf16 %v213_v50  ;;  %v1272_v54 = vunpack.c.h.bf16 %v213_v50 }
  0xb3   :  { %v228_v55 = vadd.f32 1.0, %v224_v51  ;;  %v229_v56 = vadd.f32 1.0, %v225_v52 }
  0xb4   :  { %v220_v57 = vmul.f32 0.328125, %v1270_v53  ;;  %v221_v58 = vmul.f32 0.328125, %v1272_v54  ;;  %v336_v52 = vsub.f32 0.0, %v1270_v53 }
  0xb5   :  { %v232_v59 = vpack.c.bf16 %v229_v56, %v228_v55  ;;  %v337_v55 = vsub.f32 0.0, %v1272_v54 }
  0xb6   :  { %v223_v60 = vpack.c.bf16 %v221_v58, %v220_v57  ;;  %v340_v58 = vunpack.c.l.bf16 %v338_v43 }
  0xb7   :  { %v234_v61 = vunpack.c.l.bf16 %v232_v59  ;;  %v235_v62 = vunpack.c.h.bf16 %v232_v59  ;;  %v341_v59 = vunpack.c.h.bf16 %v338_v43 }
  0xb8   :  { %v226_v63 = vunpack.c.l.bf16 %v223_v60  ;;  %v227_v0 = vunpack.c.h.bf16 %v223_v60 }
  0xb9   :  { %1056 = vrcp.f32 %v234_v61 }
  0xba   :  { %v230_v2 = vadd.f32 1.0, %v226_v63  ;;  %v231_v3 = vadd.f32 1.0, %v227_v0  ;;  %1058 = vrcp.f32 %v235_v62  ;;  %v339_v0 = vpack.c.bf16 %v337_v55, %v336_v52 }
  0xbc   :  { %v233_v4 = vpack.c.bf16 %v231_v3, %v230_v2 }
  0xbe   :  { %v236_v5 = vunpack.c.l.bf16 %v233_v4  ;;  %v237_v6 = vunpack.c.h.bf16 %v233_v4  ;;  %v344_v4 = vmul.f32 %v340_v58, %v1259_v38 }
  0xbf   :  { %v1057_v7 = vpop.eup %1056 }
  0xc0   :  { %v1059_v8 = vpop.eup %1058  ;;  %1060 = vrcp.f32 %v236_v5  ;;  %v345_v5 = vmul.f32 %v341_v59, %v1261_v39 }
  0xc1   :  { %1062 = vrcp.f32 %v237_v6  ;;  %v242_v9 = vpack.c.bf16 %v1059_v8, %v1057_v7 }
  0xc3   :  { %v1276_v10 = vunpack.c.l.bf16 %v242_v9  ;;  %v1278_v11 = vunpack.c.h.bf16 %v242_v9 }
  0xc5   :  { %v248_v12 = vmul.f32 1.0625, %v1276_v10  ;;  %v249_v13 = vmul.f32 1.0625, %v1278_v11 }
  0xc6   :  { %v1061_v14 = vpop.eup %1060 }
  0xc7   :  { %v1063_v15 = vpop.eup %1062  ;;  %v252_v16 = vpack.c.bf16 %v249_v13, %v248_v12 }
  0xc8   :  { %v243_v17 = vpack.c.bf16 %v1063_v15, %v1061_v14  ;;  %v342_v14 = vunpack.c.l.bf16 %v339_v0  ;;  %v343_v15 = vunpack.c.h.bf16 %v339_v0 }
  0xc9   :  { %v254_v18 = vunpack.c.l.bf16 %v252_v16  ;;  %v255_v19 = vunpack.c.h.bf16 %v252_v16 }
  0xca   :  { %v1282_v20 = vunpack.c.l.bf16 %v243_v17  ;;  %v1284_v21 = vunpack.c.h.bf16 %v243_v17  ;;  %v348_v17 = vpack.c.bf16 %v345_v5, %v344_v4  ;;  %v346_v38 = vmul.f32 %v342_v14, %v1270_v53 }
  0xcb   :  { %v258_v22 = vadd.f32 -1.453125, %v254_v18  ;;  %v259_v23 = vadd.f32 -1.453125, %v255_v19  ;;  %v347_v39 = vmul.f32 %v343_v15, %v1272_v54 }
  0xcc   :  { %v250_v24 = vmul.f32 1.0625, %v1282_v20  ;;  %v251_v25 = vmul.f32 1.0625, %v1284_v21  ;;  %v351_v30 = vunpack.c.h.bf16 %v348_v17 }
  0xcd   :  { %v262_v26 = vpack.c.bf16 %v259_v23, %v258_v22 }
  0xce   :  { %v253_v27 = vpack.c.bf16 %v251_v25, %v250_v24  ;;  %v356_v43 = vmul.f32 1.442695, %v351_v30 }
  0xcf   :  { %v264_v28 = vunpack.c.l.bf16 %v262_v26  ;;  %v265_v29 = vunpack.c.h.bf16 %v262_v26 }
  0xd0   :  { %v256_v34 = vunpack.c.l.bf16 %v253_v27  ;;  %v257_v35 = vunpack.c.h.bf16 %v253_v27  ;;  %v350_v27 = vunpack.c.l.bf16 %v348_v17 }
  0xd1   :  { %v268_v36 = vmul.f32 %v264_v28, %v1276_v10  ;;  %v269_v37 = vmul.f32 %v265_v29, %v1278_v11 }
  0xd2   :  { %v260_v40 = vadd.f32 -1.453125, %v256_v34  ;;  %v261_v41 = vadd.f32 -1.453125, %v257_v35  ;;  %v349_v35 = vpack.c.bf16 %v347_v39, %v346_v38 }
  0xd3   :  { %v272_v42 = vpack.c.bf16 %v269_v37, %v268_v36 }
  0xd4   :  { %v263_v44 = vpack.c.bf16 %v261_v41, %v260_v40  ;;  %v354_v40 = vmul.f32 1.442695, %v350_v27 }
  0xd5   :  { %v274_v45 = vunpack.c.l.bf16 %v272_v42  ;;  %v275_v49 = vunpack.c.h.bf16 %v272_v42 }
  0xd6   :  { %v266_v50 = vunpack.c.l.bf16 %v263_v44  ;;  %v267_v51 = vunpack.c.h.bf16 %v263_v44  ;;  %1064 = vpow2.f32 %v354_v40 }
  0xd7   :  { %v278_v56 = vadd.f32 1.421875, %v274_v45  ;;  %v279_v57 = vadd.f32 1.421875, %v275_v49  ;;  %v352_v49 = vunpack.c.l.bf16 %v349_v35  ;;  %1066 = vpow2.f32 %v356_v43 }
  0xd8   :  { %v270_v60 = vmul.f32 %v266_v50, %v1282_v20  ;;  %v271_v61 = vmul.f32 %v267_v51, %v1284_v21  ;;  %v353_v51 = vunpack.c.h.bf16 %v349_v35 }
  0xd9   :  { %v282_v62 = vpack.c.bf16 %v279_v57, %v278_v56  ;;  %v358_v59 = vmul.f32 1.442695, %v352_v49 }
  0xda   :  { %v273_v63 = vpack.c.bf16 %v271_v61, %v270_v60 }
  0xdb   :  { %v284_v2 = vunpack.c.l.bf16 %v282_v62  ;;  %v285_v3 = vunpack.c.h.bf16 %v282_v62  ;;  %v360_v62 = vmul.f32 1.442695, %v353_v51  ;;  %1068 = vpow2.f32 %v358_v59 }
  0xdc   :  { %v276_v6 = vunpack.c.l.bf16 %v273_v63  ;;  %v277_v7 = vunpack.c.h.bf16 %v273_v63  ;;  %v390_v59 = vunpack.c.l.bf16 %v1267_v48 }
  0xdd   :  { %v288_v8 = vmul.f32 %v284_v2, %v1276_v10  ;;  %v289_v9 = vmul.f32 %v285_v3, %v1278_v11  ;;  %v1065_v2 = vpop.eup %1064  ;;  %1070 = vpow2.f32 %v360_v62 }
  0xde   :  { %v280_v12 = vadd.f32 1.421875, %v276_v6  ;;  %v281_v13 = vadd.f32 1.421875, %v277_v7  ;;  %v1067_v4 = vpop.eup %1066  ;;  %vm394_vm4 = vcmp.lt.f32.partialorder %v390_v59, 0.0 }
  0xdf   :  { %v292_v16 = vpack.c.bf16 %v289_v9, %v288_v8  ;;  %v362_v14 = vpack.c.bf16 %v1067_v4, %v1065_v2 }
  0xe0   :  { %v283_v18 = vpack.c.bf16 %v281_v13, %v280_v12 }
  0xe1   :  { %v294_v19 = vunpack.c.l.bf16 %v292_v16  ;;  %v295_v22 = vunpack.c.h.bf16 %v292_v16  ;;  %v368_v38 = vunpack.c.l.bf16 %v362_v14  ;;  %v369_v39 = vunpack.c.h.bf16 %v362_v14 }
  0xe2   :  { %v286_v23 = vunpack.c.l.bf16 %v283_v18  ;;  %v287_v24 = vunpack.c.h.bf16 %v283_v18  ;;  %v1069_v18 = vpop.eup %1068  ;;  %v421_v14 = vunpack.c.h.bf16 %v1254_v32 }
  0xe3   :  { %v298_v25 = vadd.f32 -0.28515625, %v294_v19  ;;  %v299_v26 = vadd.f32 -0.28515625, %v295_v22  ;;  %v1071_v22 = vpop.eup %1070 }
  0xe4   :  { %v290_v28 = vmul.f32 %v286_v23, %v1282_v20  ;;  %v291_v29 = vmul.f32 %v287_v24, %v1284_v21 }
  0xe5   :  { %v302_v31 = vpack.c.bf16 %v299_v26, %v298_v25 }
  0xe6   :  { %v293_v34 = vpack.c.bf16 %v291_v29, %v290_v28 }
  0xe7   :  { %v304_v36 = vunpack.c.l.bf16 %v302_v31  ;;  %v305_v37 = vunpack.c.h.bf16 %v302_v31 }
  0xe8   :  { %v296_v41 = vunpack.c.l.bf16 %v293_v34  ;;  %v297_v42 = vunpack.c.h.bf16 %v293_v34 }
  0xe9   :  { %v308_v53 = vmul.f32 %v304_v36, %v1276_v10  ;;  %v309_v54 = vmul.f32 %v305_v37, %v1278_v11 }
  0xea   :  { %v300_v44 = vadd.f32 -0.28515625, %v296_v41  ;;  %v301_v45 = vadd.f32 -0.28515625, %v297_v42 }
  0xeb   :  { %v312_v50 = vpack.c.bf16 %v309_v54, %v308_v53 }
  0xec   :  { %v303_v52 = vpack.c.bf16 %v301_v45, %v300_v44  ;;  %v388_v45 = vunpack.c.l.bf16 %v1256_v33 }
  0xed   :  { %v314_v55 = vunpack.c.l.bf16 %v312_v50  ;;  %v315_v56 = vunpack.c.h.bf16 %v312_v50 }
  0xee   :  { %v306_v57 = vunpack.c.l.bf16 %v303_v52  ;;  %v307_v58 = vunpack.c.h.bf16 %v303_v52  ;;  %vm392_vm1 = vcmp.lt.f32.partialorder %v388_v45, 0.0  ;;  %v1045_v45 = vld [vmem:[%s1410_s9 + $0x20] sm:$0xff] }
  0xef   :  { %v318_v60 = vadd.f32 0.25390625, %v314_v55  ;;  %v319_v61 = vadd.f32 0.25390625, %v315_v56 }
  0xf0   :  { %v310_v63 = vmul.f32 %v306_v57, %v1282_v20  ;;  %v311_v0 = vmul.f32 %v307_v58, %v1284_v21 }
  0xf1   :  { %v322_v3 = vpack.c.bf16 %v319_v61, %v318_v60  ;;  %v391_v60 = vunpack.c.h.bf16 %v1267_v48 }
  0xf2   :  { %v313_v5 = vpack.c.bf16 %v311_v0, %v310_v63 }
  0xf3   :  { %v324_v6 = vunpack.c.l.bf16 %v322_v3  ;;  %v325_v7 = vunpack.c.h.bf16 %v322_v3  ;;  %vm395_vm5 = vcmp.lt.f32.partialorder %v391_v60, 0.0 }
  0xf4   :  { %v316_v8 = vunpack.c.l.bf16 %v313_v5  ;;  %v317_v9 = vunpack.c.h.bf16 %v313_v5  ;;  %vm407_vm6 = vmpackc.low %vm395_vm5, %vm394_vm4 }
  0xf5   :  { %v328_v12 = vmul.f32 %v324_v6, %v1276_v10  ;;  %v329_v13 = vmul.f32 %v325_v7, %v1278_v11  ;;  %v363_v11 = vpack.c.bf16 %v1071_v22, %v1069_v18 }
  0xf6   :  { %v320_v15 = vadd.f32 0.25390625, %v316_v8  ;;  %v321_v16 = vadd.f32 0.25390625, %v317_v9 }
  0xf7   :  { %v332_v17 = vpack.c.bf16 %v329_v13, %v328_v12  ;;  %v370_v40 = vunpack.c.l.bf16 %v363_v11  ;;  %v371_v41 = vunpack.c.h.bf16 %v363_v11  ;;  %v420_v12 = vunpack.c.l.bf16 %v1254_v32  ;;  %v598_v32 = vld [vmem:[%s1408_s7] sm:$0x1] }
  0xf8   :  { %v323_v19 = vpack.c.bf16 %v321_v16, %v320_v15  ;;  %v599_v11 = vpack.c.bf16 %v598_v32, %v598_v32 }
  0xf9   :  { %v364_v23 = vunpack.c.l.bf16 %v332_v17  ;;  %v365_v24 = vunpack.c.h.bf16 %v332_v17 }
  0xfa   :  { %v326_v25 = vunpack.c.l.bf16 %v323_v19  ;;  %v327_v26 = vunpack.c.h.bf16 %v323_v19 }
  0xfb   :  { %v372_v27 = vmul.f32 %v368_v38, %v364_v23  ;;  %v373_v28 = vmul.f32 %v369_v39, %v365_v24  ;;  %v422_v38 = vunpack.c.l.bf16 %v1265_v47 }
  0xfc   :  { %v330_v29 = vmul.f32 %v326_v25, %v1282_v20  ;;  %v331_v10 = vmul.f32 %v327_v26, %v1284_v21  ;;  %v389_v20 = vunpack.c.h.bf16 %v1256_v33  ;;  %v423_v25 = vunpack.c.h.bf16 %v1265_v47  ;;  %v1055_v47 = vld [vmem:[%s1407_s6] ss:$0 sm:$0xff] }
  0xfd   :  { %v376_v30 = vpack.c.bf16 %v373_v28, %v372_v27 }
  0xfe   :  { %v333_v31 = vpack.c.bf16 %v331_v10, %v330_v29  ;;  %vm393_vm2 = vcmp.lt.f32.partialorder %v389_v20, 0.0 }
  0xff   :  { %v378_v34 = vunpack.c.l.bf16 %v376_v30  ;;  %v379_v35 = vunpack.c.h.bf16 %v376_v30  ;;  %vm406_vm3 = vmpackc.low %vm393_vm2, %vm392_vm1  ;;  %v1048_v30 = vld [vmem:[%s1410_s9 + $0x38] sm:$0xff] }
 0x100   :  { %v366_v36 = vunpack.c.l.bf16 %v333_v31  ;;  %v367_v37 = vunpack.c.h.bf16 %v333_v31  ;;  %831 = vmatpush.bf16.msrb.mxu0 %v1048_v30  ;;  %v1047_v31 = vld [vmem:[%s1410_s9 + $0x30] sm:$0xff] }
 0x101   :  { %v382_v42 = vsub.f32 1.0, %v378_v34  ;;  %v383_v43 = vsub.f32 1.0, %v379_v35  ;;  %v611_v34 = vld [vmem:[%s1409_s8] sm:$0x1]  ;;  %v601_v35 = vpack.i.b16 %v599_v11, %v599_v11 }
 0x102   :  { %v374_v53 = vmul.f32 %v370_v40, %v366_v36  ;;  %v375_v54 = vmul.f32 %v371_v41, %v367_v37  ;;  %v612_v41 = vpack.c.bf16 %v611_v34, %v611_v34 }
 0x103   :  { %v386_v44 = vpack.c.bf16 %v383_v43, %v382_v42  ;;  %v1046_v42 = vld [vmem:[%s1410_s9 + $0x28] sm:$0xff] }
 0x104   :  { %v377_v49 = vpack.c.bf16 %v375_v54, %v374_v53  ;;  %832 = vmatpush.bf16.msrb.mxu0 %v1047_v31  ;;  %v603_v53 = vperm.slane %v601_v35, 0 }
 0x105   :  { %v396_v21 = vunpack.c.l.bf16 %v386_v44  ;;  %v397_v50 = vunpack.c.h.bf16 %v386_v44 }
 0x106   :  { %v380_v51 = vunpack.c.l.bf16 %v377_v49  ;;  %v381_v52 = vunpack.c.h.bf16 %v377_v49  ;;  %v606_v49 = vunpack.c.l.bf16 %v603_v53 }
 0x107   :  { %v400_v55 = vsub.f32 0.0, %v396_v21  ;;  %v401_v56 = vsub.f32 0.0, %v397_v50 }
 0x108   :  { %v384_v57 = vsub.f32 1.0, %v380_v51  ;;  %v385_v58 = vsub.f32 1.0, %v381_v52  ;;  %833 = vmatpush.bf16.msrb.mxu0 %v1046_v42 }
 0x109   :  { %v404_v61 = vpack.c.bf16 %v401_v56, %v400_v55 }
 0x10a   :  { %v387_v62 = vpack.c.bf16 %v385_v58, %v384_v57 }
 0x10b   :  { %v408_v63 = vsel %vm406_vm3, %v404_v61, %v386_v44  ;;  %v614_v44 = vpack.i.b16 %v612_v41, %v612_v41  ;;  %v1043_v61 = vld [vmem:[%s1410_s9 + $0x10] sm:$0xff] }
 0x10c   :  { %v398_v33 = vunpack.c.l.bf16 %v387_v62  ;;  %v399_v0 = vunpack.c.h.bf16 %v387_v62  ;;  %v410_v2 = vunpack.c.l.bf16 %v408_v63  ;;  %v411_v3 = vunpack.c.h.bf16 %v408_v63  ;;  %834 = vmatpush.bf16.msrb.mxu0 %v1045_v45 }
 0x10d   :  { %v616_v51 = vperm.slane %v614_v44, 0 }
 0x10e   :  { %v402_v4 = vsub.f32 0.0, %v398_v33  ;;  %v403_v5 = vsub.f32 0.0, %v399_v0  ;;  %v414_v6 = vadd.f32 1.0, %v410_v2  ;;  %v415_v7 = vadd.f32 1.0, %v411_v3  ;;  %v1042_v2 = vld [vmem:[%s1410_s9 + $0x8] sm:$0xff] }
 0x10f   :  { %v619_v59 = vunpack.c.l.bf16 %v616_v51 }
 0x110   :  { %v405_v8 = vpack.c.bf16 %v403_v5, %v402_v4  ;;  %v418_v9 = vpack.c.bf16 %v415_v7, %v414_v6  ;;  %v1041_v5 = vld [vmem:[%s1410_s9] sm:$0xff] }
 0x112   :  { %v409_v48 = vsel %vm407_vm6, %v405_v8, %v387_v62  ;;  %v424_v13 = vunpack.c.l.bf16 %v418_v9  ;;  %v425_v15 = vunpack.c.h.bf16 %v418_v9 }
 0x113   :  { %v412_v16 = vunpack.c.l.bf16 %v409_v48  ;;  %v413_v17 = vunpack.c.h.bf16 %v409_v48 }
 0x114   :  { %v428_v18 = vmul.f32 %v424_v13, %v420_v12  ;;  %v429_v19 = vmul.f32 %v425_v15, %v421_v14 }
 0x115   :  { %v416_v22 = vadd.f32 1.0, %v412_v16  ;;  %v417_v23 = vadd.f32 1.0, %v413_v17 }
 0x117   :  { %v419_v24 = vpack.c.bf16 %v417_v23, %v416_v22 }
 0x119   :  { %v426_v39 = vunpack.c.l.bf16 %v419_v24  ;;  %v427_v26 = vunpack.c.h.bf16 %v419_v24 }
 0x11b   :  { %v430_v27 = vmul.f32 %v426_v39, %v422_v38  ;;  %v431_v28 = vmul.f32 %v427_v26, %v423_v25 }
 0x11d   :  { %v432_v29 = vpack.c.bf16 %v430_v27, %v428_v18  ;;  %v433_v10 = vpack.c.bf16 %v431_v28, %v429_v19 }
 0x11f   :  { %574 = vmatmul.bf16.vlgmr.msra.gmra.mxu2 %v432_v29  ;;  %588 = vmatmul.bf16.vlgmr.msra.gmra.mxu3 %v433_v10 }
 0x1a2   :  { %v575_v36 = vpop.f32.mrf.mxu2  ;;  %v589_v37 = vpop.f32.mrf.mxu3 }
 0x1a3   :  { %v576_v40 = vadd.f32 %v1055_v47, %v575_v36 }
 0x1a5   :  { %v590_v43 = vadd.f32 %v589_v37, %v576_v40 }
 0x1a7   :  { %v1339_v54 = vadd.f32 %v590_v43, %v1248_v46  ;;  %v1044_v46 = vld [vmem:[%s1410_s9 + $0x18] sm:$0xff] }
 0x1a8   :  { %835 = vmatpush.bf16.msrb.mxu0 %v1044_v46 }
 0x1a9   :  { %v596_v20 = vpack.c.bf16 %v1339_v54, %v1339_v54 }
 0x1aa   :  { %v577_v21 = vpop.f32.mrf.mxu2  ;;  %v591_v55 = vpop.f32.mrf.mxu3 }
 0x1ab   :  { %v604_v50 = vunpack.c.l.bf16 %v596_v20  ;;  %v578_v52 = vadd.f32 %v1055_v47, %v577_v21 }
 0x1ac   :  { %836 = vmatpush.bf16.msrb.mxu0 %v1043_v61 }
 0x1ad   :  { %v607_v56 = vmul.f32 %v606_v49, %v604_v50  ;;  %v592_v57 = vadd.f32 %v591_v55, %v578_v52 }
 0x1af   :  { %v609_v58 = vpack.c.bf16 %v607_v56, %v607_v56  ;;  %v1350_v60 = vadd.f32 %v592_v57, %v1251_v1 }
 0x1b0   :  { %837 = vmatpush.bf16.msrb.mxu0 %v1042_v2 }
 0x1b1   :  { %v617_v62 = vunpack.c.l.bf16 %v609_v58  ;;  %v597_v63 = vpack.c.bf16 %v1350_v60, %v1350_v60 }
 0x1b3   :  { %v620_v33 = vadd.f32 %v619_v59, %v617_v62  ;;  %v605_v0 = vunpack.c.l.bf16 %v597_v63 }
 0x1b4   :  { %838 = vmatpush.bf16.msrb.mxu0 %v1041_v5 }
 0x1b5   :  { %v622_v3 = vpack.c.bf16 %v620_v33, %v620_v33  ;;  %v608_v4 = vmul.f32 %v606_v49, %v605_v0 }
 0x1b7   :  { %v610_v1 = vpack.c.bf16 %v608_v4, %v608_v4  ;;  %v1363_v6 = vunpack.c.l.bf16 %v622_v3 }
 0x1b9   :  { %v618_v7 = vunpack.c.l.bf16 %v610_v1  ;;  %v630_v8 = vmul.f32 0.70703125, %v1363_v6 }
 0x1bb   :  { %v621_v9 = vadd.f32 %v619_v59, %v618_v7  ;;  %v1366_v12 = vpack.c.bf16 %v630_v8, %v630_v8 }
 0x1bd   :  { %v623_v48 = vpack.c.bf16 %v621_v9, %v621_v9  ;;  %v634_v13 = vand.u32 2147450879, %v1366_v12 }
 0x1bf   :  { %v1369_v14 = vunpack.c.l.bf16 %v623_v48  ;;  %v636_v15 = vunpack.c.l.bf16 %v634_v13 }
 0x1c1   :  { %v631_v16 = vmul.f32 0.70703125, %v1369_v14  ;;  %v638_v17 = vmul.f32 0.328125, %v636_v15  ;;  %v708_v45 = vsub.f32 0.0, %v636_v15 }
 0x1c3   :  { %v1372_v18 = vpack.c.bf16 %v631_v16, %v631_v16  ;;  %v640_v19 = vpack.c.bf16 %v638_v17, %v638_v17  ;;  %v710_v51 = vpack.c.bf16 %v708_v45, %v708_v45 }
 0x1c5   :  { %v635_v22 = vand.u32 2147450879, %v1372_v18  ;;  %v642_v23 = vunpack.c.l.bf16 %v640_v19  ;;  %v712_v58 = vunpack.c.l.bf16 %v710_v51 }
 0x1c7   :  { %v637_v24 = vunpack.c.l.bf16 %v635_v22  ;;  %v644_v38 = vadd.f32 1.0, %v642_v23  ;;  %v714_v0 = vmul.f32 %v712_v58, %v636_v15 }
 0x1c9   :  { %v639_v39 = vmul.f32 0.328125, %v637_v24  ;;  %v646_v25 = vpack.c.bf16 %v644_v38, %v644_v38  ;;  %v709_v57 = vsub.f32 0.0, %v637_v24  ;;  %v716_v7 = vpack.c.bf16 %v714_v0, %v714_v0 }
 0x1cb   :  { %v641_v26 = vpack.c.bf16 %v639_v39, %v639_v39  ;;  %v648_v27 = vunpack.c.l.bf16 %v646_v25  ;;  %v711_v33 = vpack.c.bf16 %v709_v57, %v709_v57  ;;  %v718_v17 = vunpack.c.l.bf16 %v716_v7 }
 0x1cc   :  { %v741_v7 = vunpack.c.l.bf16 %v1372_v18 }
 0x1cd   :  { %v643_v28 = vunpack.c.l.bf16 %v641_v26  ;;  %1072 = vrcp.f32 %v648_v27  ;;  %v713_v5 = vunpack.c.l.bf16 %v711_v33  ;;  %v720_v15 = vmul.f32 1.442695, %v718_v17 }
 0x1ce   :  { %vm743_vm9 = vcmp.lt.f32.partialorder %v741_v7, 0.0 }
 0x1cf   :  { %v645_v29 = vadd.f32 1.0, %v643_v28  ;;  %v715_v16 = vmul.f32 %v713_v5, %v637_v24  ;;  %vm751_vm10 = vmpackc.low %vm743_vm9, %vm743_vm9 }
 0x1d1   :  { %v647_v10 = vpack.c.bf16 %v645_v29, %v645_v29  ;;  %v717_v39 = vpack.c.bf16 %v715_v16, %v715_v16 }
 0x1d3   :  { %v1073_v32 = vpop.eup %1072  ;;  %v649_v11 = vunpack.c.l.bf16 %v647_v10  ;;  %v719_v29 = vunpack.c.l.bf16 %v717_v39 }
 0x1d4   :  { %v652_v30 = vpack.c.bf16 %v1073_v32, %v1073_v32 }
 0x1d5   :  { %1074 = vrcp.f32 %v649_v11  ;;  %v722_v24 = vmul.f32 1.442695, %v719_v29 }
 0x1d6   :  { %v1375_v47 = vunpack.c.l.bf16 %v652_v30  ;;  %1076 = vpow2.f32 %v720_v15 }
 0x1d7   :  { %1078 = vpow2.f32 %v722_v24 }
 0x1d8   :  { %v656_v31 = vmul.f32 1.0625, %v1375_v47 }
 0x1da   :  { %v658_v34 = vpack.c.bf16 %v656_v31, %v656_v31 }
 0x1db   :  { %v1075_v35 = vpop.eup %1074 }
 0x1dc   :  { %v653_v36 = vpack.c.bf16 %v1075_v35, %v1075_v35  ;;  %v660_v37 = vunpack.c.l.bf16 %v658_v34  ;;  %v1077_v35 = vpop.eup %1076 }
 0x1de   :  { %v1378_v40 = vunpack.c.l.bf16 %v653_v36  ;;  %v662_v41 = vadd.f32 -1.453125, %v660_v37 }
 0x1e0   :  { %v657_v42 = vmul.f32 1.0625, %v1378_v40  ;;  %v664_v43 = vpack.c.bf16 %v662_v41, %v662_v41 }
 0x1e2   :  { %v659_v53 = vpack.c.bf16 %v657_v42, %v657_v42  ;;  %v666_v44 = vunpack.c.l.bf16 %v664_v43  ;;  %v724_v43 = vpack.c.bf16 %v1077_v35, %v1077_v35 }
 0x1e4   :  { %v661_v20 = vunpack.c.l.bf16 %v659_v53  ;;  %v668_v49 = vmul.f32 %v666_v44, %v1375_v47 }
 0x1e6   :  { %v663_v21 = vadd.f32 -1.453125, %v661_v20  ;;  %v670_v50 = vpack.c.bf16 %v668_v49, %v668_v49  ;;  %v728_v49 = vunpack.c.l.bf16 %v724_v43 }
 0x1e8   :  { %v665_v52 = vpack.c.bf16 %v663_v21, %v663_v21  ;;  %v672_v46 = vunpack.c.l.bf16 %v670_v50  ;;  %v1079_v21 = vpop.eup %1078 }
 0x1ea   :  { %v667_v55 = vunpack.c.l.bf16 %v665_v52  ;;  %v674_v56 = vadd.f32 1.421875, %v672_v46  ;;  %v725_v46 = vpack.c.bf16 %v1079_v21, %v1079_v21 }
 0x1ec   :  { %v669_v59 = vmul.f32 %v667_v55, %v1378_v40  ;;  %v676_v61 = vpack.c.bf16 %v674_v56, %v674_v56 }
 0x1ee   :  { %v671_v62 = vpack.c.bf16 %v669_v59, %v669_v59  ;;  %v678_v63 = vunpack.c.l.bf16 %v676_v61  ;;  %v729_v59 = vunpack.c.l.bf16 %v725_v46 }
 0x1f0   :  { %v673_v2 = vunpack.c.l.bf16 %v671_v62  ;;  %v680_v3 = vmul.f32 %v678_v63, %v1375_v47  ;;  %v740_v63 = vunpack.c.l.bf16 %v1366_v12 }
 0x1f2   :  { %v675_v4 = vadd.f32 1.421875, %v673_v2  ;;  %v682_v1 = vpack.c.bf16 %v680_v3, %v680_v3  ;;  %vm742_vm7 = vcmp.lt.f32.partialorder %v740_v63, 0.0 }
 0x1f3   :  { %vm750_vm8 = vmpackc.low %vm742_vm7, %vm742_vm7 }
 0x1f4   :  { %v677_v8 = vpack.c.bf16 %v675_v4, %v675_v4  ;;  %v684_v9 = vunpack.c.l.bf16 %v682_v1 }
 0x1f6   :  { %v679_v48 = vunpack.c.l.bf16 %v677_v8  ;;  %v686_v13 = vadd.f32 -0.28515625, %v684_v9 }
 0x1f8   :  { %v681_v19 = vmul.f32 %v679_v48, %v1378_v40  ;;  %v688_v22 = vpack.c.bf16 %v686_v13, %v686_v13 }
 0x1fa   :  { %v683_v23 = vpack.c.bf16 %v681_v19, %v681_v19  ;;  %v690_v38 = vunpack.c.l.bf16 %v688_v22  ;;  %v627_v22 = vmul.f32 0.5, %v1369_v14 }
 0x1fc   :  { %v685_v25 = vunpack.c.l.bf16 %v683_v23  ;;  %v692_v26 = vmul.f32 %v690_v38, %v1375_v47 }
 0x1fe   :  { %v687_v27 = vadd.f32 -0.28515625, %v685_v25  ;;  %v694_v28 = vpack.c.bf16 %v692_v26, %v692_v26  ;;  %v629_v25 = vpack.c.bf16 %v627_v22, %v627_v22 }
 0x200   :  { %v689_v10 = vpack.c.bf16 %v687_v27, %v687_v27  ;;  %v696_v32 = vunpack.c.l.bf16 %v694_v28  ;;  %v761_v27 = vunpack.c.l.bf16 %v629_v25 }
 0x202   :  { %v691_v11 = vunpack.c.l.bf16 %v689_v10  ;;  %v698_v30 = vadd.f32 0.25390625, %v696_v32  ;;  %v847_v32 = vld [vmem:[#allocation2] sm:$0x1] }
 0x204   :  { %v693_v31 = vmul.f32 %v691_v11, %v1378_v40  ;;  %v700_v34 = vpack.c.bf16 %v698_v30, %v698_v30  ;;  %v1139_v11 = vmov 0  }
 0x205   :  { %1054 = vset.pattern.permute.xlu0 %v1139_v11 }
 0x206   :  { %v695_v36 = vpack.c.bf16 %v693_v31, %v693_v31  ;;  %v702_v37 = vunpack.c.l.bf16 %v700_v34  ;;  %850 = vperm.xlu0 %1054, %v847_v32  }
 0x208   :  { %v697_v41 = vunpack.c.l.bf16 %v695_v36  ;;  %v704_v42 = vmul.f32 %v702_v37, %v1375_v47  ;;  %v845_v36 = vld [vmem:[%s1411_s10] sm:$0x1] }
 0x20a   :  { %v699_v53 = vadd.f32 0.25390625, %v697_v41  ;;  %v706_v44 = vpack.c.bf16 %v704_v42, %v704_v42 }
 0x20c   :  { %v701_v45 = vpack.c.bf16 %v699_v53, %v699_v53  ;;  %v726_v20 = vunpack.c.l.bf16 %v706_v44 }
 0x20e   :  { %v703_v50 = vunpack.c.l.bf16 %v701_v45  ;;  %v730_v51 = vmul.f32 %v728_v49, %v726_v20 }
 0x210   :  { %v705_v52 = vmul.f32 %v703_v50, %v1378_v40  ;;  %v732_v55 = vpack.c.bf16 %v730_v51, %v730_v51  ;;  %v626_v40 = vmul.f32 0.5, %v1363_v6 }
 0x212   :  { %v707_v56 = vpack.c.bf16 %v705_v52, %v705_v52  ;;  %v734_v57 = vunpack.c.l.bf16 %v732_v55  ;;  %v628_v13 = vpack.c.bf16 %v626_v40, %v626_v40 }
 0x214   :  { %v727_v58 = vunpack.c.l.bf16 %v707_v56  ;;  %v736_v61 = vsub.f32 1.0, %v734_v57  ;;  %v760_v23 = vunpack.c.l.bf16 %v628_v13 }
 0x216   :  { %v731_v62 = vmul.f32 %v729_v59, %v727_v58  ;;  %v738_v47 = vpack.c.bf16 %v736_v61, %v736_v61 }
 0x218   :  { %v733_v33 = vpack.c.bf16 %v731_v62, %v731_v62  ;;  %v744_v0 = vunpack.c.l.bf16 %v738_v47 }
 0x21a   :  { %v735_v2 = vunpack.c.l.bf16 %v733_v33  ;;  %v746_v3 = vsub.f32 0.0, %v744_v0 }
 0x21c   :  { %v737_v4 = vsub.f32 1.0, %v735_v2  ;;  %v748_v1 = vpack.c.bf16 %v746_v3, %v746_v3 }
 0x21e   :  { %v739_v5 = vpack.c.bf16 %v737_v4, %v737_v4  ;;  %v752_v8 = vsel %vm750_vm8, %v748_v1, %v738_v47 }
 0x21f   :  { %v754_v9 = vunpack.c.l.bf16 %v752_v8 }
 0x220   :  { %v745_v48 = vunpack.c.l.bf16 %v739_v5 }
 0x221   :  { %v756_v16 = vadd.f32 1.0, %v754_v9 }
 0x222   :  { %v747_v12 = vsub.f32 0.0, %v745_v48 }
 0x223   :  { %v758_v17 = vpack.c.bf16 %v756_v16, %v756_v16 }
 0x224   :  { %v749_v19 = vpack.c.bf16 %v747_v12, %v747_v12 }
 0x225   :  { %v762_v38 = vunpack.c.l.bf16 %v758_v17 }
 0x226   :  { %v753_v39 = vsel %vm751_vm10, %v749_v19, %v739_v5 }
 0x227   :  { %v755_v6 = vunpack.c.l.bf16 %v753_v39  ;;  %v764_v15 = vmul.f32 %v762_v38, %v760_v23 }
 0x229   :  { %v757_v26 = vadd.f32 1.0, %v755_v6 }
 0x22b   :  { %v759_v18 = vpack.c.bf16 %v757_v26, %v757_v26 }
 0x22d   :  { %v763_v28 = vunpack.c.l.bf16 %v759_v18 }
 0x22f   :  { %v765_v29 = vmul.f32 %v763_v28, %v761_v27 }
 0x231   :  { %v766_v10 = vpack.c.bf16 %v765_v29, %v764_v15 }
 0x233   :  { %839 = vmatmul.bf16.vlgmr.msrb.gmra.mxu0 %v766_v10 }
 0x278   :  { %v851_v37 = vpop.permute.xlu0 %850 }
 0x279   :  { %v853_v41 = vperm.slane %v851_v37, 0 }
 0x2b0   :  { %v840_v30 = vpop.f32.mrf.mxu0 }
 0x2b1   :  { %v841_v24 = vadd.f32 %v840_v30, %v1339_v54 }
 0x2b8   :  { %v842_v14 = vpop.f32.mrf.mxu0 }
 0x2b9   :  { %v843_v31 = vadd.f32 %v842_v14, %v1350_v60 }
 0x2bb   :  { %v846_v34 = vpack.c.bf16 %v843_v31, %v841_v24 }
 0x2bd   :  { %v859_v35 = vsel %vm854_vm11, %v846_v34, 0 }
 0x2be   :  { %868 = vmatpush.bf16.xpose.msrb.mxu1 %v859_v35 }
 0x2c5   :  { %1019 = vmatmul.msk.bf16.vlgmr.msrb.gmra.mxu1 %vm854_vm11, %v845_v36 }
 0x342   :  { %v870_v42 = vpop.f32.mrf.mxu1 }
 0x343   :  { %v871_v43 = vadd.f32 %v870_v42, %v853_v41 }
 0x345   :  { %v875_v53 = vmin.f32 %v871_v43, 20.0  ;;  %vm874_vm13 = vcmp.gt.f32.partialorder %v871_v43, 20.0 }
 0x347   :  { %v876_v44 = vmul.f32 1.442695, %v875_v53 }
 0x349   :  { %1080 = vpow2.f32 %v876_v44 }
 0x34a   :  { %v872_v45 = vpop.f32.mrf.mxu1 }
 0x34f   :  { %v1081_v54 = vpop.eup %1080 }
 0x350   :  { %v878_v20 = vadd.f32 1.0, %v1081_v54 }
 0x352   :  { %1082 = vlog2.f32 %v878_v20 }
 0x358   :  { %v1083_v60 = vpop.eup %1082 }
 0x359   :  { %v880_v49 = vmul.f32 0.6931472, %v1083_v60 }
 0x35b   :  { %v881_v21 = vsel %vm874_vm13, %v871_v43, %v880_v49 }
 0x35c   :  { %883 = vst.msk [vmem:[#allocation6] sm:$0x1] %vm882_vm12, %v881_v21 }
 0x35d   :  { %894 = dma.vmem_to_hbm [thread:$0]  %s890_s1, 16, %s892_s3, [#allocation5]  }
 0x35e   :  { %1134 = dma.done.wait [#allocation5], 16  }
 0x35f   :  { %1135 = vsyncadd [#allocation5], 4294967280 }
 0x360   :  { %899 = vsyncpa [#allocation4], 1 }
 0x361   :  { %900 = vsyncpa [#allocation5], 1 }

</bundles_post_ra>
